<compile_context>
chip_gen: v5e
topology: v5e:2x2
jax: 0.10.0
libtpu: 0.0.40
codegen_flags: <defaults>
</compile_context>

<pallas_src>
import jax
import jax.numpy as jnp
from jax.experimental import pallas as pl
from jax.experimental.pallas import tpu as pltpu

_SUBLANE = 8


def _round_up(x, m):
    return (x + m - 1) // m * m


def _actor_kernel(obs_ref, w1_ref, b1_ref, w2_ref, b2_ref, w3_ref, b3_ref,
                  scale_ref, bias_ref, out_ref):
    # In-kernel cast of the streamed obs tile (no-op for f32 weights; a cheap
    # VPU cast hidden under DMA slack for the bf16 weight path).
    x = obs_ref[...].astype(w1_ref.dtype)
    # Layer 1: Linear + ReLU (MXU matmul, f32 accumulation; epilogue in f32).
    h = jnp.dot(x, w1_ref[...], preferred_element_type=jnp.float32) + b1_ref[...]
    h = jnp.maximum(h, 0.0)
    # Layer 2: Linear + ReLU.
    h = jnp.dot(h.astype(w2_ref.dtype), w2_ref[...],
                preferred_element_type=jnp.float32) + b2_ref[...]
    h = jnp.maximum(h, 0.0)
    # Layer 3: Linear + Tanh (mlp output activation).
    h = jnp.dot(h.astype(w3_ref.dtype), w3_ref[...],
                preferred_element_type=jnp.float32) + b3_ref[...]
    a = jnp.tanh(h)
    # forward(): limit_scale * (pi(obs) + limit_bias)  -- same rounding order.
    out_ref[...] = (scale_ref[...] * (a + bias_ref[...])).astype(out_ref.dtype)


def _pick_batch_tile(B, block_b):
    # Multiple of 8 sublanes; at most block_b rows; for large B keep >= 8 grid
    # steps so v7x's two TensorCores each get several pipelined tiles.
    min_steps = 8
    tb = max(_SUBLANE, _round_up(pl.cdiv(B, min_steps), _SUBLANE))
    tb = min(tb, _round_up(block_b, _SUBLANE))
    tb = min(tb, _round_up(B, _SUBLANE))
    return tb


def prepare_params(params, compute_dtype=jnp.float32):
    """Cast the weight matrices ONCE (outside the per-call path).

    Biases, limit_scale and limit_bias stay f32 (epilogue precision)."""
    p = dict(params)
    for k in ("w1", "w2", "w3"):
        p[k] = params[k].astype(compute_dtype)
    return p


def mlp_deterministic_actor_forward(obs, params, *, block_b=8192,
                                    out_dtype=jnp.float32):
    """obs: (B, obs_dim) f32.  params: dict with w1/b1/w2/b2/w3/b3/limits.

    No wrapper-side array ops: obs and params go straight into pallas_call."""
    B, obs_dim = obs.shape
    h1 = params["w1"].shape[1]
    h2 = params["w2"].shape[1]
    act_dim = params["w3"].shape[1]

    tb = _pick_batch_tile(B, block_b)
    grid = (pl.cdiv(B, tb),)

    def resident(shape):
        # Full-array block with a constant index_map -> DMA'd once, VMEM-resident.
        return pl.BlockSpec(shape, lambda i: (0, 0))

    return pl.pallas_call(
        _actor_kernel,
        out_shape=jax.ShapeDtypeStruct((B, act_dim), out_dtype),
        grid=grid,
        in_specs=[
            pl.BlockSpec((tb, obs_dim), lambda i: (i, 0)),   # streamed obs tile
            resident((obs_dim, h1)), resident((1, h1)),
            resident((h1, h2)), resident((1, h2)),
            resident((h2, act_dim)), resident((1, act_dim)),
            resident((1, act_dim)), resident((1, act_dim)),
        ],
        # Unpadded (tb, act_dim) output block: last dim == full array dim.
        out_specs=pl.BlockSpec((tb, act_dim), lambda i: (i, 0)),
        compiler_params=pltpu.CompilerParams(
            dimension_semantics=("parallel",)),   # shard batch across TCs (v7x)
    )(obs, params["w1"], params["b1"], params["w2"], params["b2"],
      params["w3"], params["b3"], params["limit_scale"], params["limit_bias"])


def init_params(key, obs_dim, hidden_sizes, act_dim, act_limit_high, act_limit_low):
    """Deterministic synthetic init (PyTorch Linear init, stored transposed)."""
    sizes = [obs_dim] + list(hidden_sizes) + [act_dim]
    keys = jax.random.split(key, 2 * (len(sizes) - 1))
    params = {}
    for j in range(len(sizes) - 1):
        fan_in, fan_out = sizes[j], sizes[j + 1]
        bound = 1.0 / jnp.sqrt(fan_in)
        params[f"w{j + 1}"] = jax.random.uniform(
            keys[2 * j], (fan_in, fan_out), minval=-bound, maxval=bound,
            dtype=jnp.float32)
        params[f"b{j + 1}"] = jax.random.uniform(
            keys[2 * j + 1], (1, fan_out), minval=-bound, maxval=bound,
            dtype=jnp.float32)
    params["limit_bias"] = ((act_limit_high + act_limit_low) / 2.0).reshape(1, act_dim)
    params["limit_scale"] = ((act_limit_high - act_limit_low) / 2.0).reshape(1, act_dim)
    return params


def reference_forward(obs, params):
    """Pure-JAX f32 reference of the PyTorch forward."""
    h = jnp.maximum(obs @ params["w1"] + params["b1"], 0.0)
    h = jnp.maximum(h @ params["w2"] + params["b2"], 0.0)
    a = jnp.tanh(h @ params["w3"] + params["b3"])
    return params["limit_scale"] * (a + params["limit_bias"])


if __name__ == "__main__":
    # Small shapes consistent with the module: obs_dim=16, hidden=(32,32), act_dim=8
    B, OBS_DIM, HIDDEN, ACT_DIM = 8, 16, (32, 32), 8

    key = jax.random.PRNGKey(0)
    k_obs, k_params, k_obs2 = jax.random.split(key, 3)

    obs = jax.random.normal(k_obs, (B, OBS_DIM), dtype=jnp.float32)
    act_high = jnp.full((ACT_DIM,), 2.0, dtype=jnp.float32)
    act_low = jnp.full((ACT_DIM,), -0.5, dtype=jnp.float32)
    params = init_params(k_params, OBS_DIM, HIDDEN, ACT_DIM, act_high, act_low)

    # 1) f32 path, single grid step: exact check vs reference.
    out = jax.block_until_ready(mlp_deterministic_actor_forward(obs, params))
    ref = reference_forward(obs, params)
    assert out.shape == (B, ACT_DIM)
    assert jnp.allclose(out, ref, atol=1e-5, rtol=1e-5), "f32 kernel mismatch"

    # 2) bf16 weight-streaming path (perf path for v6e/v7x): weights are cast
    #    once via prepare_params; loose tolerance vs f32 reference.
    params_bf16 = prepare_params(params, jnp.bfloat16)
    out_bf16 = jax.block_until_ready(
        mlp_deterministic_actor_forward(obs, params_bf16))
    assert out_bf16.shape == (B, ACT_DIM)
    assert jnp.allclose(out_bf16, ref, atol=2e-2, rtol=2e-2), "bf16 kernel mismatch"

    # 3) Multi-step grid with a ragged batch (B not a multiple of the tile);
    #    no wrapper-side padding — the boundary block is masked by Pallas.
    B2 = 300
    obs2 = jax.random.normal(k_obs2, (B2, OBS_DIM), dtype=jnp.float32)
    out2 = jax.block_until_ready(
        mlp_deterministic_actor_forward(obs2, params, block_b=64))
    ref2 = reference_forward(obs2, params)
    assert out2.shape == (B2, ACT_DIM)
    assert jnp.allclose(out2, ref2, atol=1e-5, rtol=1e-5), "tiled kernel mismatch"

    print("KERNEL_OK")
</pallas_src>

<mosaic_0001>
module attributes {stable_mosaic.version = 11 : i64} {
  func.func @_actor_kernel(%arg0: i32, %arg1: memref<8x16xf32, #tpu.memory_space<vmem>>, %arg2: memref<16x32xf32, #tpu.memory_space<vmem>>, %arg3: memref<1x32xf32, #tpu.memory_space<vmem>>, %arg4: memref<32x32xf32, #tpu.memory_space<vmem>>, %arg5: memref<1x32xf32, #tpu.memory_space<vmem>>, %arg6: memref<32x8xf32, #tpu.memory_space<vmem>>, %arg7: memref<1x8xf32, #tpu.memory_space<vmem>>, %arg8: memref<1x8xf32, #tpu.memory_space<vmem>>, %arg9: memref<1x8xf32, #tpu.memory_space<vmem>>, %arg10: memref<8x8xf32, #tpu.memory_space<vmem>>) attributes {dimension_semantics = [#tpu.dimension_semantics<parallel>], iteration_bounds = array<i64: 1>, scalar_prefetch = 0 : i64, scratch_operands = 0 : i64, tpu.core_type = #tpu.core_type<tc>, window_params = [{transform_indices = @transform_0, window_bounds = array<i64: 8, 16>}, {pipeline_mode = #tpu.pipeline_mode<synchronous>, transform_indices = @transform_1, window_bounds = array<i64: 16, 32>}, {pipeline_mode = #tpu.pipeline_mode<synchronous>, transform_indices = @transform_2, window_bounds = array<i64: 1, 32>}, {pipeline_mode = #tpu.pipeline_mode<synchronous>, transform_indices = @transform_3, window_bounds = array<i64: 32, 32>}, {pipeline_mode = #tpu.pipeline_mode<synchronous>, transform_indices = @transform_4, window_bounds = array<i64: 1, 32>}, {pipeline_mode = #tpu.pipeline_mode<synchronous>, transform_indices = @transform_5, window_bounds = array<i64: 32, 8>}, {pipeline_mode = #tpu.pipeline_mode<synchronous>, transform_indices = @transform_6, window_bounds = array<i64: 1, 8>}, {pipeline_mode = #tpu.pipeline_mode<synchronous>, transform_indices = @transform_7, window_bounds = array<i64: 1, 8>}, {pipeline_mode = #tpu.pipeline_mode<synchronous>, transform_indices = @transform_8, window_bounds = array<i64: 1, 8>}, {transform_indices = @transform_9, window_bounds = array<i64: 8, 8>}]} {
    %c0 = arith.constant 0 : index
    %c0_0 = arith.constant 0 : index
    %0 = vector.load %arg1[%c0, %c0_0] : memref<8x16xf32, #tpu.memory_space<vmem>>, vector<8x16xf32>
    %c0_1 = arith.constant 0 : index
    %c0_2 = arith.constant 0 : index
    %1 = vector.load %arg2[%c0_1, %c0_2] : memref<16x32xf32, #tpu.memory_space<vmem>>, vector<16x32xf32>
    %cst = arith.constant dense<0.000000e+00> : vector<8x32xf32>
    %2 = tpu.matmul %0, %1, %cst {dimension_numbers = #tpu.dot_dimension_numbers<[1], [0], [0], [1], [0, 0, 1, 1], [], []>} : vector<8x16xf32>, vector<16x32xf32>, vector<8x32xf32> -> vector<8x32xf32>
    %c0_3 = arith.constant 0 : index
    %c0_4 = arith.constant 0 : index
    %3 = vector.load %arg3[%c0_3, %c0_4] : memref<1x32xf32, #tpu.memory_space<vmem>>, vector<1x32xf32>
    %4 = vector.broadcast %3 : vector<1x32xf32> to vector<8x32xf32>
    %5 = arith.addf %2, %4 : vector<8x32xf32>
    %cst_5 = arith.constant 0.000000e+00 : f32
    %6 = vector.broadcast %cst_5 : f32 to vector<8x32xf32>
    %7 = arith.maximumf %5, %6 : vector<8x32xf32>
    %c0_6 = arith.constant 0 : index
    %c0_7 = arith.constant 0 : index
    %8 = vector.load %arg4[%c0_6, %c0_7] : memref<32x32xf32, #tpu.memory_space<vmem>>, vector<32x32xf32>
    %cst_8 = arith.constant dense<0.000000e+00> : vector<8x32xf32>
    %9 = tpu.matmul %7, %8, %cst_8 {dimension_numbers = #tpu.dot_dimension_numbers<[1], [0], [0], [1], [0, 0, 1, 1], [], []>} : vector<8x32xf32>, vector<32x32xf32>, vector<8x32xf32> -> vector<8x32xf32>
    %c0_9 = arith.constant 0 : index
    %c0_10 = arith.constant 0 : index
    %10 = vector.load %arg5[%c0_9, %c0_10] : memref<1x32xf32, #tpu.memory_space<vmem>>, vector<1x32xf32>
    %11 = vector.broadcast %10 : vector<1x32xf32> to vector<8x32xf32>
    %12 = arith.addf %9, %11 : vector<8x32xf32>
    %cst_11 = arith.constant 0.000000e+00 : f32
    %13 = vector.broadcast %cst_11 : f32 to vector<8x32xf32>
    %14 = arith.maximumf %12, %13 : vector<8x32xf32>
    %c0_12 = arith.constant 0 : index
    %c0_13 = arith.constant 0 : index
    %15 = vector.load %arg6[%c0_12, %c0_13] : memref<32x8xf32, #tpu.memory_space<vmem>>, vector<32x8xf32>
    %cst_14 = arith.constant dense<0.000000e+00> : vector<8x8xf32>
    %16 = tpu.matmul %14, %15, %cst_14 {dimension_numbers = #tpu.dot_dimension_numbers<[1], [0], [0], [1], [0, 0, 1, 1], [], []>} : vector<8x32xf32>, vector<32x8xf32>, vector<8x8xf32> -> vector<8x8xf32>
    %c0_15 = arith.constant 0 : index
    %c0_16 = arith.constant 0 : index
    %17 = vector.load %arg7[%c0_15, %c0_16] : memref<1x8xf32, #tpu.memory_space<vmem>>, vector<1x8xf32>
    %18 = vector.broadcast %17 : vector<1x8xf32> to vector<8x8xf32>
    %19 = arith.addf %16, %18 : vector<8x8xf32>
    %20 = math.tanh %19 : vector<8x8xf32>
    %c0_17 = arith.constant 0 : index
    %c0_18 = arith.constant 0 : index
    %21 = vector.load %arg8[%c0_17, %c0_18] : memref<1x8xf32, #tpu.memory_space<vmem>>, vector<1x8xf32>
    %c0_19 = arith.constant 0 : index
    %c0_20 = arith.constant 0 : index
    %22 = vector.load %arg9[%c0_19, %c0_20] : memref<1x8xf32, #tpu.memory_space<vmem>>, vector<1x8xf32>
    %23 = vector.broadcast %22 : vector<1x8xf32> to vector<8x8xf32>
    %24 = arith.addf %20, %23 : vector<8x8xf32>
    %25 = vector.broadcast %21 : vector<1x8xf32> to vector<8x8xf32>
    %26 = arith.mulf %25, %24 : vector<8x8xf32>
    %c0_21 = arith.constant 0 : index
    %c0_22 = arith.constant 0 : index
    %27 = vector.load %arg10[%c0_21, %c0_22] : memref<8x8xf32, #tpu.memory_space<vmem>>, vector<8x8xf32>
    tpu.vector_store %arg10[%c0_21, %c0_22], %26 {strides = array<i32>} : memref<8x8xf32, #tpu.memory_space<vmem>>, vector<8x8xf32>,
    return
  }
  func.func @transform_0(%arg0: i32) -> (i32, i32) {
    %c0_i32 = arith.constant 0 : i32
    %c0_i32_0 = arith.constant 0 : i32
    return %arg0, %c0_i32 : i32, i32
  }
  func.func @transform_1(%arg0: i32) -> (i32, i32) {
    %c0_i32 = arith.constant 0 : i32
    %c0_i32_0 = arith.constant 0 : i32
    %c0_i32_1 = arith.constant 0 : i32
    return %c0_i32, %c0_i32_0 : i32, i32
  }
  func.func @transform_2(%arg0: i32) -> (i32, i32) {
    %c0_i32 = arith.constant 0 : i32
    %c0_i32_0 = arith.constant 0 : i32
    %c0_i32_1 = arith.constant 0 : i32
    return %c0_i32, %c0_i32_0 : i32, i32
  }
  func.func @transform_3(%arg0: i32) -> (i32, i32) {
    %c0_i32 = arith.constant 0 : i32
    %c0_i32_0 = arith.constant 0 : i32
    %c0_i32_1 = arith.constant 0 : i32
    return %c0_i32, %c0_i32_0 : i32, i32
  }
  func.func @transform_4(%arg0: i32) -> (i32, i32) {
    %c0_i32 = arith.constant 0 : i32
    %c0_i32_0 = arith.constant 0 : i32
    %c0_i32_1 = arith.constant 0 : i32
    return %c0_i32, %c0_i32_0 : i32, i32
  }
  func.func @transform_5(%arg0: i32) -> (i32, i32) {
    %c0_i32 = arith.constant 0 : i32
    %c0_i32_0 = arith.constant 0 : i32
    %c0_i32_1 = arith.constant 0 : i32
    return %c0_i32, %c0_i32_0 : i32, i32
  }
  func.func @transform_6(%arg0: i32) -> (i32, i32) {
    %c0_i32 = arith.constant 0 : i32
    %c0_i32_0 = arith.constant 0 : i32
    %c0_i32_1 = arith.constant 0 : i32
    return %c0_i32, %c0_i32_0 : i32, i32
  }
  func.func @transform_7(%arg0: i32) -> (i32, i32) {
    %c0_i32 = arith.constant 0 : i32
    %c0_i32_0 = arith.constant 0 : i32
    %c0_i32_1 = arith.constant 0 : i32
    return %c0_i32, %c0_i32_0 : i32, i32
  }
  func.func @transform_8(%arg0: i32) -> (i32, i32) {
    %c0_i32 = arith.constant 0 : i32
    %c0_i32_0 = arith.constant 0 : i32
    %c0_i32_1 = arith.constant 0 : i32
    return %c0_i32, %c0_i32_0 : i32, i32
  }
  func.func @transform_9(%arg0: i32) -> (i32, i32) {
    %c0_i32 = arith.constant 0 : i32
    %c0_i32_0 = arith.constant 0 : i32
    return %arg0, %c0_i32 : i32, i32
  }
}

</mosaic_0001>

<bundles_post_ra>
// kernel: tpu_custom_call.1
= control target key start
LH: loop header
LB: loop body
LE: loop exit
PB: predicated region body
PF: predicated region fallthrough
CT: control target
= control target key end

     0   :  { %14 = vsyncpa [#allocation3], 0  ;;  %s343_s0 = inlined_call_operand.vmem [shape: f32[8,16], index: 0, kind: input, shape index: {}]   ;;  %s344_s1 = inlined_call_operand.hbm [shape: f32[16,32], index: 1, kind: input, shape index: {}]   ;;  %s345_s2 = inlined_call_operand.vmem [shape: f32[1,32], index: 2, kind: input, shape index: {}]   ;;  %s346_s3 = inlined_call_operand.vmem [shape: f32[32,32], index: 3, kind: input, shape index: {}]   ;;  %s347_s4 = inlined_call_operand.vmem [shape: f32[1,32], index: 4, kind: input, shape index: {}]   ;;  %s348_s5 = inlined_call_operand.vmem [shape: f32[32,8], index: 5, kind: input, shape index: {}]   ;;  %s349_s6 = inlined_call_operand.vmem [shape: f32[1,8], index: 6, kind: input, shape index: {}]   ;;  %s350_s7 = inlined_call_operand.vmem [shape: f32[1,8], index: 7, kind: input, shape index: {}]   ;;  %s351_s8 = inlined_call_operand.vmem [shape: f32[1,8], index: 8, kind: input, shape index: {}]   ;;  %s352_s9 = inlined_call_operand.hbm [shape: f32[8,8], index: 9, kind: output, shape index: {}]  }
   0x1   :  { %15 = vsyncpa [#allocation4], 0  ;;  %s22_s11 = sshll.u32 %s344_s1, 4  ;;  %s241_s12 = smov [#allocation2]   ;;  %s23_s11 = int_to_ptr.hbm [resolvable:$true] %s22_s11 }
   0x2   :  { %s24_s13 = sshll.u32 %s241_s12, 4  ;;  %s242_s14 = smov 128   ;;  %s25_s13 = int_to_ptr.vmem [resolvable:$true] %s24_s13 }
   0x3   :  { %s243_s15 = smov 8  }
   0x4   :  { %30 = dma.hbm_to_vmem [thread:$0]  %s23_s11, 256, %s25_s13, [#allocation3], %s242_s14, %s242_s14, %s243_s15  }
   0x5   :  { %237 = dma.done.wait [#allocation3], 256  }
   0x6   :  { %238 = vsyncadd [#allocation3], 4294967040  ;;  %v51_v0 = vld [vmem:[#allocation2 + $0x8] sm:$0xff]  ;;  %v50_v1 = vld [vmem:[#allocation2] sm:$0xff]  ;;  %vm56_vm0 = vcmask 130048   ;;  %vm89_vm1 = vcmask 261120  }
   0x7   :  { %74 = vmatpush.msra.mxu0 %v51_v0  ;;  %v49_v2 = vld [vmem:[%s343_s0] sm:$0xff]  ;;  %v84_v3 = vld [vmem:[%s346_s3 + $0x18] sm:$0xff]  ;;  %v83_v4 = vld [vmem:[%s346_s3 + $0x10] sm:$0xff]  ;;  %s165_s20 = sshll.u32 %s352_s9, 4  ;;  %vm156_vm2 = vcmask 64512   ;;  %s166_s20 = int_to_ptr.hbm [resolvable:$true] %s165_s20 }
   0x8   :  { %105 = vmatpush.msra.mxu1 %v84_v3  ;;  %v82_v5 = vld [vmem:[%s346_s3 + $0x8] sm:$0xff]  ;;  %v81_v6 = vld [vmem:[%s346_s3] sm:$0xff]  ;;  %v117_v7 = vld [vmem:[%s348_s5 + $0x18] sm:$0xff] }
   0x9   :  { %75 = vmatpush.msra.mxu0 %v50_v1  ;;  %137 = vmatpush.msra.mxu2 %v117_v7  ;;  %v182_v8 = vld [vmem:[%s345_s2] ss:$0 sm:$0xff]  ;;  %v116_v12 = vld [vmem:[%s348_s5 + $0x10] sm:$0xff]  ;;  %v115_v13 = vld [vmem:[%s348_s5 + $0x8] sm:$0xff] }
   0xa   :  { %175 = vmatmul.msk.f32.vlgmr.msra.gmra.mxu0 %vm56_vm0, %v49_v2  ;;  %106 = vmatpush.msra.mxu1 %v83_v4  ;;  %v114_v14 = vld [vmem:[%s348_s5] sm:$0xff] }
   0xb   :  { %138 = vmatpush.msra.mxu2 %v116_v12  ;;  %v183_v15 = vld [vmem:[%s347_s4] ss:$0 sm:$0xff]  ;;  %s244_s4 = smov [#allocation5]  }
   0xc   :  { %107 = vmatpush.msra.mxu1 %v82_v5  ;;  %v184_v19 = vld [vmem:[%s349_s6] ss:$0 sm:$0xff]  ;;  %s163_s18 = sshll.u32 %s244_s4, 4  ;;  %s164_s18 = int_to_ptr.vmem [resolvable:$true] %s163_s18 }
   0xd   :  { %139 = vmatpush.msra.mxu2 %v115_v13  ;;  %v185_v22 = vld [vmem:[%s351_s8] ss:$0 sm:$0xff] }
   0xe   :  { %108 = vmatpush.msra.mxu1 %v81_v6  ;;  %v186_v23 = vld [vmem:[%s350_s7] ss:$0 sm:$0xff] }
   0xf   :  { %140 = vmatpush.msra.mxu2 %v114_v14 }
  0x87   :  { %v77_v9 = vpop.f32.mrf.mxu0 }
  0x88   :  { %v78_v10 = vadd.f32 %v182_v8, %v77_v9 }
  0x8a   :  { %v80_v11 = vmax.f32 %v78_v10, 0.0 }
  0x8c   :  { %176 = vmatmul.msk.f32.vlgmr.msra.gmra.mxu1 %vm89_vm1, %v80_v11 }
 0x109   :  { %v110_v16 = vpop.f32.mrf.mxu1 }
 0x10a   :  { %v111_v17 = vadd.f32 %v183_v15, %v110_v16 }
 0x10c   :  { %v113_v18 = vmax.f32 %v111_v17, 0.0 }
 0x10e   :  { %177 = vmatmul.msk.f32.vlgmr.msra.gmra.mxu2 %vm89_vm1, %v113_v18 }
 0x191   :  { %v142_v20 = vpop.f32.mrf.mxu2 }
 0x192   :  { %v143_v21 = vadd.f32 %v184_v19, %v142_v20 }
 0x194   :  { %187 = vtanh.f32 %v143_v21 }
 0x19a   :  { %v188_v24 = vpop.eup %187 }
 0x19b   :  { %v151_v25 = vadd.f32 %v188_v24, %v185_v22 }
 0x19d   :  { %v155_v26 = vmul.f32 %v186_v23, %v151_v25 }
 0x19f   :  { %157 = vst.msk [vmem:[#allocation5] sm:$0xff] %vm156_vm2, %v155_v26 }
 0x1a0   :  { %168 = dma.vmem_to_hbm [thread:$0]  %s164_s18, 128, %s166_s20, [#allocation4]  }
 0x1a1   :  { %239 = dma.done.wait [#allocation4], 128  }
 0x1a2   :  { %240 = vsyncadd [#allocation4], 4294967168 }
 0x1a3   :  { %173 = vsyncpa [#allocation3], 1 }
 0x1a4   :  { %174 = vsyncpa [#allocation4], 1 }

</bundles_post_ra>
